<compile_context>
chip_gen: v6e
topology: v6e:2x2x1
jax: 0.10.0
libtpu: 0.0.40
codegen_flags: <defaults>
</compile_context>

<pallas_src>
import functools

import jax
import jax.numpy as jnp
from jax import lax
from jax.experimental import pallas as pl
from jax.experimental.pallas import tpu as pltpu


# ---------------------------------------------------------------------------
# Fused kernel: MLP -> grouped softmax -> (Gumbel-)argmax one-hot -> ST.
# Everything stays lane-dense (tb, C*K); per-group max/sum/min reductions use
# an XOR-butterfly over aligned, contiguous segments of K lanes.
# ---------------------------------------------------------------------------
def _dreamer_latent_kernel(x_ref, w1_ref, b1_ref, w2_ref, b2_ref, *rest,
                           n_classes, mode):
    if mode == "det":
        (logits_ref, latents_ref), rand_ref = rest, None
    else:
        rand_ref, logits_ref, latents_ref = rest

    # ---- MLP hot path: bf16 operands on the MXU, f32 accumulation ----------
    h = jnp.dot(x_ref[...], w1_ref[...], preferred_element_type=jnp.float32)
    h = jnp.maximum(h + b1_ref[...], 0.0)                    # bias + ReLU (norm=Identity)
    logits = jnp.dot(h.astype(jnp.bfloat16), w2_ref[...],
                     preferred_element_type=jnp.float32) + b2_ref[...]
    logits_ref[...] = logits                                  # lane-dense (tb, C*K) store

    # ---- grouped reductions (lane-dense XOR-butterfly) ----------------------
    k = n_classes                                             # power of two
    lane = lax.broadcasted_iota(jnp.int32, logits.shape, 1)
    lane_in_group = lane & (k - 1)

    shifts = []
    s = 1
    while s < k:
        shifts.append(s)
        s *= 2
    # Hoisted once per grid step and reused by every butterfly pass below
    # (JAX does not CSE these broadcast/compare ops).
    take_up = [(lane_in_group & s_) == 0 for s_ in shifts]

    def seg_allreduce(v, op):
        # All-reduce within aligned, contiguous segments of k lanes.
        # Partner of lane i at step s is i XOR s (always inside the group).
        # TODO(synk): use pltpu.roll on hardware-tuned builds (guaranteed XLU
        # lane-rotate); jnp.roll kept for interpret-mode portability.
        y = v
        for s_, up_mask in zip(shifts, take_up):
            up = jnp.roll(y, -s_, axis=-1)                    # y[i + s]
            dn = jnp.roll(y, s_, axis=-1)                     # y[i - s]
            y = op(y, jnp.where(up_mask, up, dn))
        return y

    # Numerically stable grouped softmax.
    m = seg_allreduce(logits, jnp.maximum)
    e = jnp.exp(logits - m)
    denom = seg_allreduce(e, jnp.add)
    probs = e / denom

    # ---- one-hot selection ---------------------------------------------------
    if mode == "det":
        score, smax = logits, m                               # argmax(probs) == argmax(logits)
    else:
        if mode == "host":
            noise = rand_ref[...].astype(jnp.float32)         # streamed bf16 Gumbel noise
        else:  # mode == "prng": generate Gumbel noise on-chip (no HBM noise read)
            pltpu.prng_seed(rand_ref[0], pl.program_id(0))
            bits = pltpu.bitcast(pltpu.prng_random_bits(logits.shape), jnp.uint32)
            u = ((bits >> jnp.uint32(8)).astype(jnp.float32) * (1.0 / (1 << 24))
                 + (0.5 / (1 << 24)))                         # uniform in (0, 1)
            noise = -jnp.log(-jnp.log(u))
        score = logits + noise                                # Gumbel-max == categorical sample
        smax = seg_allreduce(score, jnp.maximum)

    # First-index tie-break (matches torch.argmax).  smax is a bit-exact element
    # of score (butterfly max of finite f32), so the equality test is safe.
    cand = jnp.where(score == smax, lane_in_group, k)
    sel = seg_allreduce(cand, jnp.minimum)
    one_hot = (lane_in_group == sel).astype(jnp.float32)

    # Straight-through estimator.  (probs - stop_grad(probs)) == 0 in the
    # forward pass, so the stored value is exactly the one-hot sample.
    # TODO(synk): gradients do not flow through pallas_call; wrap
    # discrete_latent_dist in jax.custom_vjp before training use.
    latents_ref[...] = one_hot + (probs - lax.stop_gradient(probs))


# ---------------------------------------------------------------------------
# Wrapper helpers
# ---------------------------------------------------------------------------
def _round_up(n, m):
    return ((n + m - 1) // m) * m


def _pick_batch_tile(batch, batch_tile):
    if batch <= 8:
        return batch                      # block == full array is always legal
    tb = min(int(batch_tile), _round_up(batch, 8))
    # v7x megacore: "parallel" grid axes shard across the 2 TensorCores, so make
    # sure there are at least 2 grid steps (harmless on single-TC v5e/v6e).
    tb = min(tb, _round_up(pl.cdiv(batch, 2), 8))
    return max(tb, 8)


def _pick_vmem_limit():
    # ~3/4 of physical VMEM per core, capped at 100 MiB:
    #   v5e/v6e (128 MiB) -> ~96-100 MiB, v7x (64 MiB) -> 48 MiB.
    try:
        cap = int(pltpu.get_tpu_info().vmem_capacity_bytes)
        return int(min(cap * 3 // 4, 100 * 1024 * 1024))
    except Exception:
        return None


def _resident_spec(shape):
    # Constant index_map -> DMA'd once, stays resident in VMEM across the grid.
    # Buffered(1) disables the (useless) double buffer for these operands.
    const_map = lambda i: (0, 0)
    try:
        return pl.BlockSpec(shape, const_map, pipeline_mode=pl.Buffered(1))
    except (TypeError, AttributeError):   # older jax without pipeline_mode
        return pl.BlockSpec(shape, const_map)


# ---------------------------------------------------------------------------
# Public wrapper: batch-tiled grid, resident bf16 weights, lane-dense outputs.
# ---------------------------------------------------------------------------
def discrete_latent_dist(x, params, *, n_categoricals, n_classes, key=None,
                         deterministic=False, batch_tile=256,
                         use_device_prng=False, vmem_limit_bytes="auto"):
    if n_classes & (n_classes - 1) != 0:
        # TODO(synk): butterfly segment-reduce assumes power-of-two n_classes
        # (Dreamer default 32); pad classes or fall back otherwise.
        raise ValueError("n_classes must be a power of two")

    w1, b1, w2, b2 = params
    in_dim = x.shape[-1]
    hidden = w1.shape[-1]
    ck = n_categoricals * n_classes
    lead = x.shape[:-1]

    # bf16 MXU operands (no-op casts if the caller already holds bf16 params).
    x2 = x.reshape(-1, in_dim).astype(jnp.bfloat16)
    w1c = jnp.asarray(w1, jnp.bfloat16)
    w2c = jnp.asarray(w2, jnp.bfloat16)
    b1c = jnp.asarray(b1, jnp.float32).reshape(1, hidden)
    b2c = jnp.asarray(b2, jnp.float32).reshape(1, ck)

    B = x2.shape[0]
    tb = _pick_batch_tile(B, batch_tile)
    grid = (pl.cdiv(B, tb),)
    # Note: if tb does not divide B, the padded rows of the last block read
    # uninitialized VMEM; any inf/NaN stays confined to those rows (butterflies
    # only mix along lanes) and their writes are dropped.

    row_map = lambda i: (i, 0)
    in_specs = [
        pl.BlockSpec((tb, in_dim), row_map),       # x: streamed per batch tile
        _resident_spec((in_dim, hidden)),          # w1 (bf16, resident, single-buffered)
        _resident_spec((1, hidden)),               # b1
        _resident_spec((hidden, ck)),              # w2
        _resident_spec((1, ck)),                   # b2
    ]
    args = [x2, w1c, b1c, w2c, b2c]

    if deterministic:
        mode = "det"
    elif use_device_prng:
        # Hardware-tuned path: Gumbel noise generated in-kernel (pltpu.prng_*).
        mode = "prng"
        if key is None:
            key = jax.random.PRNGKey(0)
        seed = jax.random.randint(key, (1,), 0, jnp.iinfo(jnp.int32).max,
                                  dtype=jnp.int32)
        in_specs.append(pl.BlockSpec(memory_space=pltpu.MemorySpace.SMEM))
        args.append(seed)
    else:
        # Portable path: host-generated Gumbel noise streamed per tile (bf16).
        mode = "host"
        if key is None:
            key = jax.random.PRNGKey(0)
        noise = jax.random.gumbel(key, (B, ck), dtype=jnp.float32).astype(jnp.bfloat16)
        in_specs.append(pl.BlockSpec((tb, ck), row_map))
        args.append(noise)

    out_specs = [pl.BlockSpec((tb, ck), row_map),
                 pl.BlockSpec((tb, ck), row_map)]
    out_shape = [jax.ShapeDtypeStruct((B, ck), jnp.float32),
                 jax.ShapeDtypeStruct((B, ck), jnp.float32)]

    cp_kwargs = dict(dimension_semantics=("parallel",))     # megacore sharding on v7x
    if vmem_limit_bytes == "auto":
        vmem_limit_bytes = _pick_vmem_limit()
    if vmem_limit_bytes is not None:
        cp_kwargs["vmem_limit_bytes"] = int(vmem_limit_bytes)

    logits, latents = pl.pallas_call(
        functools.partial(_dreamer_latent_kernel, n_classes=n_classes, mode=mode),
        grid=grid,
        in_specs=in_specs,
        out_specs=out_specs,
        out_shape=out_shape,
        compiler_params=pltpu.CompilerParams(**cp_kwargs),
    )(*args)

    return logits.reshape(lead + (ck,)), latents.reshape(lead + (ck,))


# ---------------------------------------------------------------------------
# Demo / self-check (small shapes)
# ---------------------------------------------------------------------------
if __name__ == "__main__":
    B, in_dim, hidden = 8, 32, 32
    n_categoricals, n_classes = 4, 8
    out_dim = n_categoricals * n_classes

    key = jax.random.PRNGKey(0)
    ks = jax.random.split(key, 5)
    s1 = 1.0 / jnp.sqrt(in_dim)
    s2 = 1.0 / jnp.sqrt(hidden)
    # Deterministic synthetic params (PyTorch Linear-style uniform init ranges).
    w1 = jax.random.uniform(ks[0], (in_dim, hidden), jnp.float32, -s1, s1)
    b1 = jax.random.uniform(ks[1], (hidden,), jnp.float32, -s1, s1)
    w2 = jax.random.uniform(ks[2], (hidden, out_dim), jnp.float32, -s2, s2)
    b2 = jax.random.uniform(ks[3], (out_dim,), jnp.float32, -s2, s2)
    x = jax.random.normal(ks[4], (B, in_dim), jnp.float32)
    params = (w1, b1, w2, b2)

    # Pure-JAX f32 reference for the logits path (kernel uses bf16 MXU operands,
    # so the tolerance is loose).
    logits_ref = jnp.maximum(x @ w1 + b1, 0.0) @ w2 + b2

    def check_one_hot(lat):
        lat3 = lat.reshape(B, n_categoricals, n_classes)
        assert jnp.allclose(lat3.sum(-1), 1.0, atol=1e-5)
        near01 = (jnp.abs(lat3) < 1e-5) | (jnp.abs(lat3 - 1.0) < 1e-5)
        assert bool(jnp.all(near01))
        return jnp.argmax(lat3, axis=-1)

    # Stochastic (default) path.
    logits_s, latents_s = discrete_latent_dist(
        x, params, n_categoricals=n_categoricals, n_classes=n_classes,
        key=jax.random.PRNGKey(42), deterministic=False)
    jax.block_until_ready((logits_s, latents_s))
    assert jnp.allclose(logits_s, logits_ref, atol=5e-2, rtol=5e-2)
    check_one_hot(latents_s)

    # Deterministic path: one-hot must sit at the argmax of the returned logits.
    logits_d, latents_d = discrete_latent_dist(
        x, params, n_categoricals=n_categoricals, n_classes=n_classes,
        deterministic=True)
    jax.block_until_ready((logits_d, latents_d))
    assert jnp.allclose(logits_d, logits_ref, atol=5e-2, rtol=5e-2)
    idx_lat = check_one_hot(latents_d)
    idx_log = jnp.argmax(logits_d.reshape(B, n_categoricals, n_classes), axis=-1)
    assert bool(jnp.array_equal(idx_lat, idx_log))

    print("KERNEL_OK")
</pallas_src>

<mosaic_0001>
module attributes {stable_mosaic.version = 11 : i64} {
  func.func @_dreamer_latent_kernel(%arg0: i32, %arg1: memref<8x32xbf16, #tpu.memory_space<vmem>>, %arg2: memref<32x32xbf16, #tpu.memory_space<vmem>>, %arg3: memref<1x32xf32, #tpu.memory_space<vmem>>, %arg4: memref<32x32xbf16, #tpu.memory_space<vmem>>, %arg5: memref<1x32xf32, #tpu.memory_space<vmem>>, %arg6: memref<8x32xbf16, #tpu.memory_space<vmem>>, %arg7: memref<8x32xf32, #tpu.memory_space<vmem>>, %arg8: memref<8x32xf32, #tpu.memory_space<vmem>>) attributes {dimension_semantics = [#tpu.dimension_semantics<parallel>], iteration_bounds = array<i64: 1>, scalar_prefetch = 0 : i64, scratch_operands = 0 : i64, tpu.core_type = #tpu.core_type<tc>, window_params = [{transform_indices = @transform_0, window_bounds = array<i64: 8, 32>}, {pipeline_mode = #tpu.pipeline_mode<synchronous>, transform_indices = @transform_1, window_bounds = array<i64: 32, 32>}, {pipeline_mode = #tpu.pipeline_mode<synchronous>, transform_indices = @transform_2, window_bounds = array<i64: 1, 32>}, {pipeline_mode = #tpu.pipeline_mode<synchronous>, transform_indices = @transform_3, window_bounds = array<i64: 32, 32>}, {pipeline_mode = #tpu.pipeline_mode<synchronous>, transform_indices = @transform_4, window_bounds = array<i64: 1, 32>}, {transform_indices = @transform_5, window_bounds = array<i64: 8, 32>}, {transform_indices = @transform_6, window_bounds = array<i64: 8, 32>}, {transform_indices = @transform_7, window_bounds = array<i64: 8, 32>}]} {
    %c0 = arith.constant 0 : index
    %c0_0 = arith.constant 0 : index
    %0 = vector.load %arg1[%c0, %c0_0] : memref<8x32xbf16, #tpu.memory_space<vmem>>, vector<8x32xbf16>
    %c0_1 = arith.constant 0 : index
    %c0_2 = arith.constant 0 : index
    %1 = vector.load %arg2[%c0_1, %c0_2] : memref<32x32xbf16, #tpu.memory_space<vmem>>, vector<32x32xbf16>
    %cst = arith.constant dense<0.000000e+00> : vector<8x32xf32>
    %2 = tpu.matmul %0, %1, %cst {dimension_numbers = #tpu.dot_dimension_numbers<[1], [0], [0], [1], [0, 0, 1, 1], [], []>} : vector<8x32xbf16>, vector<32x32xbf16>, vector<8x32xf32> -> vector<8x32xf32>
    %c0_3 = arith.constant 0 : index
    %c0_4 = arith.constant 0 : index
    %3 = vector.load %arg3[%c0_3, %c0_4] : memref<1x32xf32, #tpu.memory_space<vmem>>, vector<1x32xf32>
    %4 = vector.broadcast %3 : vector<1x32xf32> to vector<8x32xf32>
    %5 = arith.addf %2, %4 : vector<8x32xf32>
    %cst_5 = arith.constant 0.000000e+00 : f32
    %6 = vector.broadcast %cst_5 : f32 to vector<8x32xf32>
    %7 = arith.maximumf %5, %6 : vector<8x32xf32>
    %8 = arith.truncf %7 : vector<8x32xf32> to vector<8x32xbf16>
    %c0_6 = arith.constant 0 : index
    %c0_7 = arith.constant 0 : index
    %9 = vector.load %arg4[%c0_6, %c0_7] : memref<32x32xbf16, #tpu.memory_space<vmem>>, vector<32x32xbf16>
    %cst_8 = arith.constant dense<0.000000e+00> : vector<8x32xf32>
    %10 = tpu.matmul %8, %9, %cst_8 {dimension_numbers = #tpu.dot_dimension_numbers<[1], [0], [0], [1], [0, 0, 1, 1], [], []>} : vector<8x32xbf16>, vector<32x32xbf16>, vector<8x32xf32> -> vector<8x32xf32>
    %c0_9 = arith.constant 0 : index
    %c0_10 = arith.constant 0 : index
    %11 = vector.load %arg5[%c0_9, %c0_10] : memref<1x32xf32, #tpu.memory_space<vmem>>, vector<1x32xf32>
    %12 = vector.broadcast %11 : vector<1x32xf32> to vector<8x32xf32>
    %13 = arith.addf %10, %12 : vector<8x32xf32>
    %c0_11 = arith.constant 0 : index
    %c0_12 = arith.constant 0 : index
    %14 = vector.load %arg7[%c0_11, %c0_12] : memref<8x32xf32, #tpu.memory_space<vmem>>, vector<8x32xf32>
    tpu.vector_store %arg7[%c0_11, %c0_12], %13 {strides = array<i32>} : memref<8x32xf32, #tpu.memory_space<vmem>>, vector<8x32xf32>,
    %15 = tpu.iota {dimensions = array<i32: 1>} : vector<8x32xi32>
    %c7_i32 = arith.constant 7 : i32
    %16 = vector.broadcast %c7_i32 : i32 to vector<8x32xi32>
    %17 = arith.andi %15, %16 : vector<8x32xi32>
    %c1_i32 = arith.constant 1 : i32
    %18 = vector.broadcast %c1_i32 : i32 to vector<8x32xi32>
    %19 = arith.andi %17, %18 : vector<8x32xi32>
    %c0_i32 = arith.constant 0 : i32
    %20 = vector.broadcast %c0_i32 : i32 to vector<8x32xi32>
    %21 = arith.cmpi eq, %19, %20 : vector<8x32xi32>
    %c2_i32 = arith.constant 2 : i32
    %22 = vector.broadcast %c2_i32 : i32 to vector<8x32xi32>
    %23 = arith.andi %17, %22 : vector<8x32xi32>
    %c0_i32_13 = arith.constant 0 : i32
    %24 = vector.broadcast %c0_i32_13 : i32 to vector<8x32xi32>
    %25 = arith.cmpi eq, %23, %24 : vector<8x32xi32>
    %c4_i32 = arith.constant 4 : i32
    %26 = vector.broadcast %c4_i32 : i32 to vector<8x32xi32>
    %27 = arith.andi %17, %26 : vector<8x32xi32>
    %c0_i32_14 = arith.constant 0 : i32
    %28 = vector.broadcast %c0_i32_14 : i32 to vector<8x32xi32>
    %29 = arith.cmpi eq, %27, %28 : vector<8x32xi32>
    %30 = vector.extract_strided_slice %13 {offsets = [0, 1], sizes = [8, 31], strides = [1, 1]} : vector<8x32xf32> to vector<8x31xf32>
    %31 = vector.extract_strided_slice %13 {offsets = [0, 0], sizes = [8, 1], strides = [1, 1]} : vector<8x32xf32> to vector<8x1xf32>
    %32 = tpu.concatenate %30, %31 in 1 : vector<8x31xf32>, vector<8x1xf32> -> vector<8x32xf32>
    %33 = vector.extract_strided_slice %13 {offsets = [0, 31], sizes = [8, 1], strides = [1, 1]} : vector<8x32xf32> to vector<8x1xf32>
    %34 = vector.extract_strided_slice %13 {offsets = [0, 0], sizes = [8, 31], strides = [1, 1]} : vector<8x32xf32> to vector<8x31xf32>
    %35 = tpu.concatenate %33, %34 in 1 : vector<8x1xf32>, vector<8x31xf32> -> vector<8x32xf32>
    %36 = arith.select %21, %32, %35 : vector<8x32xi1>, vector<8x32xf32>
    %37 = arith.maximumf %13, %36 : vector<8x32xf32>
    %38 = vector.extract_strided_slice %37 {offsets = [0, 2], sizes = [8, 30], strides = [1, 1]} : vector<8x32xf32> to vector<8x30xf32>
    %39 = vector.extract_strided_slice %37 {offsets = [0, 0], sizes = [8, 2], strides = [1, 1]} : vector<8x32xf32> to vector<8x2xf32>
    %40 = tpu.concatenate %38, %39 in 1 : vector<8x30xf32>, vector<8x2xf32> -> vector<8x32xf32>
    %41 = vector.extract_strided_slice %37 {offsets = [0, 30], sizes = [8, 2], strides = [1, 1]} : vector<8x32xf32> to vector<8x2xf32>
    %42 = vector.extract_strided_slice %37 {offsets = [0, 0], sizes = [8, 30], strides = [1, 1]} : vector<8x32xf32> to vector<8x30xf32>
    %43 = tpu.concatenate %41, %42 in 1 : vector<8x2xf32>, vector<8x30xf32> -> vector<8x32xf32>
    %44 = arith.select %25, %40, %43 : vector<8x32xi1>, vector<8x32xf32>
    %45 = arith.maximumf %37, %44 : vector<8x32xf32>
    %46 = vector.extract_strided_slice %45 {offsets = [0, 4], sizes = [8, 28], strides = [1, 1]} : vector<8x32xf32> to vector<8x28xf32>
    %47 = vector.extract_strided_slice %45 {offsets = [0, 0], sizes = [8, 4], strides = [1, 1]} : vector<8x32xf32> to vector<8x4xf32>
    %48 = tpu.concatenate %46, %47 in 1 : vector<8x28xf32>, vector<8x4xf32> -> vector<8x32xf32>
    %49 = vector.extract_strided_slice %45 {offsets = [0, 28], sizes = [8, 4], strides = [1, 1]} : vector<8x32xf32> to vector<8x4xf32>
    %50 = vector.extract_strided_slice %45 {offsets = [0, 0], sizes = [8, 28], strides = [1, 1]} : vector<8x32xf32> to vector<8x28xf32>
    %51 = tpu.concatenate %49, %50 in 1 : vector<8x4xf32>, vector<8x28xf32> -> vector<8x32xf32>
    %52 = arith.select %29, %48, %51 : vector<8x32xi1>, vector<8x32xf32>
    %53 = arith.maximumf %45, %52 : vector<8x32xf32>
    %54 = arith.subf %13, %53 : vector<8x32xf32>
    %55 = math.exp %54 : vector<8x32xf32>
    %56 = vector.extract_strided_slice %55 {offsets = [0, 1], sizes = [8, 31], strides = [1, 1]} : vector<8x32xf32> to vector<8x31xf32>
    %57 = vector.extract_strided_slice %55 {offsets = [0, 0], sizes = [8, 1], strides = [1, 1]} : vector<8x32xf32> to vector<8x1xf32>
    %58 = tpu.concatenate %56, %57 in 1 : vector<8x31xf32>, vector<8x1xf32> -> vector<8x32xf32>
    %59 = vector.extract_strided_slice %55 {offsets = [0, 31], sizes = [8, 1], strides = [1, 1]} : vector<8x32xf32> to vector<8x1xf32>
    %60 = vector.extract_strided_slice %55 {offsets = [0, 0], sizes = [8, 31], strides = [1, 1]} : vector<8x32xf32> to vector<8x31xf32>
    %61 = tpu.concatenate %59, %60 in 1 : vector<8x1xf32>, vector<8x31xf32> -> vector<8x32xf32>
    %62 = arith.select %21, %58, %61 : vector<8x32xi1>, vector<8x32xf32>
    %63 = arith.addf %55, %62 : vector<8x32xf32>
    %64 = vector.extract_strided_slice %63 {offsets = [0, 2], sizes = [8, 30], strides = [1, 1]} : vector<8x32xf32> to vector<8x30xf32>
    %65 = vector.extract_strided_slice %63 {offsets = [0, 0], sizes = [8, 2], strides = [1, 1]} : vector<8x32xf32> to vector<8x2xf32>
    %66 = tpu.concatenate %64, %65 in 1 : vector<8x30xf32>, vector<8x2xf32> -> vector<8x32xf32>
    %67 = vector.extract_strided_slice %63 {offsets = [0, 30], sizes = [8, 2], strides = [1, 1]} : vector<8x32xf32> to vector<8x2xf32>
    %68 = vector.extract_strided_slice %63 {offsets = [0, 0], sizes = [8, 30], strides = [1, 1]} : vector<8x32xf32> to vector<8x30xf32>
    %69 = tpu.concatenate %67, %68 in 1 : vector<8x2xf32>, vector<8x30xf32> -> vector<8x32xf32>
    %70 = arith.select %25, %66, %69 : vector<8x32xi1>, vector<8x32xf32>
    %71 = arith.addf %63, %70 : vector<8x32xf32>
    %72 = vector.extract_strided_slice %71 {offsets = [0, 4], sizes = [8, 28], strides = [1, 1]} : vector<8x32xf32> to vector<8x28xf32>
    %73 = vector.extract_strided_slice %71 {offsets = [0, 0], sizes = [8, 4], strides = [1, 1]} : vector<8x32xf32> to vector<8x4xf32>
    %74 = tpu.concatenate %72, %73 in 1 : vector<8x28xf32>, vector<8x4xf32> -> vector<8x32xf32>
    %75 = vector.extract_strided_slice %71 {offsets = [0, 28], sizes = [8, 4], strides = [1, 1]} : vector<8x32xf32> to vector<8x4xf32>
    %76 = vector.extract_strided_slice %71 {offsets = [0, 0], sizes = [8, 28], strides = [1, 1]} : vector<8x32xf32> to vector<8x28xf32>
    %77 = tpu.concatenate %75, %76 in 1 : vector<8x4xf32>, vector<8x28xf32> -> vector<8x32xf32>
    %78 = arith.select %29, %74, %77 : vector<8x32xi1>, vector<8x32xf32>
    %79 = arith.addf %71, %78 : vector<8x32xf32>
    %80 = arith.divf %55, %79 : vector<8x32xf32>
    %c0_15 = arith.constant 0 : index
    %c0_16 = arith.constant 0 : index
    %81 = vector.load %arg6[%c0_15, %c0_16] : memref<8x32xbf16, #tpu.memory_space<vmem>>, vector<8x32xbf16>
    %82 = arith.extf %81 : vector<8x32xbf16> to vector<8x32xf32>
    %83 = arith.addf %13, %82 : vector<8x32xf32>
    %84 = vector.extract_strided_slice %83 {offsets = [0, 1], sizes = [8, 31], strides = [1, 1]} : vector<8x32xf32> to vector<8x31xf32>
    %85 = vector.extract_strided_slice %83 {offsets = [0, 0], sizes = [8, 1], strides = [1, 1]} : vector<8x32xf32> to vector<8x1xf32>
    %86 = tpu.concatenate %84, %85 in 1 : vector<8x31xf32>, vector<8x1xf32> -> vector<8x32xf32>
    %87 = vector.extract_strided_slice %83 {offsets = [0, 31], sizes = [8, 1], strides = [1, 1]} : vector<8x32xf32> to vector<8x1xf32>
    %88 = vector.extract_strided_slice %83 {offsets = [0, 0], sizes = [8, 31], strides = [1, 1]} : vector<8x32xf32> to vector<8x31xf32>
    %89 = tpu.concatenate %87, %88 in 1 : vector<8x1xf32>, vector<8x31xf32> -> vector<8x32xf32>
    %90 = arith.select %21, %86, %89 : vector<8x32xi1>, vector<8x32xf32>
    %91 = arith.maximumf %83, %90 : vector<8x32xf32>
    %92 = vector.extract_strided_slice %91 {offsets = [0, 2], sizes = [8, 30], strides = [1, 1]} : vector<8x32xf32> to vector<8x30xf32>
    %93 = vector.extract_strided_slice %91 {offsets = [0, 0], sizes = [8, 2], strides = [1, 1]} : vector<8x32xf32> to vector<8x2xf32>
    %94 = tpu.concatenate %92, %93 in 1 : vector<8x30xf32>, vector<8x2xf32> -> vector<8x32xf32>
    %95 = vector.extract_strided_slice %91 {offsets = [0, 30], sizes = [8, 2], strides = [1, 1]} : vector<8x32xf32> to vector<8x2xf32>
    %96 = vector.extract_strided_slice %91 {offsets = [0, 0], sizes = [8, 30], strides = [1, 1]} : vector<8x32xf32> to vector<8x30xf32>
    %97 = tpu.concatenate %95, %96 in 1 : vector<8x2xf32>, vector<8x30xf32> -> vector<8x32xf32>
    %98 = arith.select %25, %94, %97 : vector<8x32xi1>, vector<8x32xf32>
    %99 = arith.maximumf %91, %98 : vector<8x32xf32>
    %100 = vector.extract_strided_slice %99 {offsets = [0, 4], sizes = [8, 28], strides = [1, 1]} : vector<8x32xf32> to vector<8x28xf32>
    %101 = vector.extract_strided_slice %99 {offsets = [0, 0], sizes = [8, 4], strides = [1, 1]} : vector<8x32xf32> to vector<8x4xf32>
    %102 = tpu.concatenate %100, %101 in 1 : vector<8x28xf32>, vector<8x4xf32> -> vector<8x32xf32>
    %103 = vector.extract_strided_slice %99 {offsets = [0, 28], sizes = [8, 4], strides = [1, 1]} : vector<8x32xf32> to vector<8x4xf32>
    %104 = vector.extract_strided_slice %99 {offsets = [0, 0], sizes = [8, 28], strides = [1, 1]} : vector<8x32xf32> to vector<8x28xf32>
    %105 = tpu.concatenate %103, %104 in 1 : vector<8x4xf32>, vector<8x28xf32> -> vector<8x32xf32>
    %106 = arith.select %29, %102, %105 : vector<8x32xi1>, vector<8x32xf32>
    %107 = arith.maximumf %99, %106 : vector<8x32xf32>
    %108 = arith.cmpf oeq, %83, %107 : vector<8x32xf32>
    %c8_i32 = arith.constant 8 : i32
    %109 = vector.broadcast %c8_i32 : i32 to vector<8x32xi32>
    %110 = arith.select %108, %17, %109 : vector<8x32xi1>, vector<8x32xi32>
    %111 = vector.extract_strided_slice %110 {offsets = [0, 1], sizes = [8, 31], strides = [1, 1]} : vector<8x32xi32> to vector<8x31xi32>
    %112 = vector.extract_strided_slice %110 {offsets = [0, 0], sizes = [8, 1], strides = [1, 1]} : vector<8x32xi32> to vector<8x1xi32>
    %113 = tpu.concatenate %111, %112 in 1 : vector<8x31xi32>, vector<8x1xi32> -> vector<8x32xi32>
    %114 = vector.extract_strided_slice %110 {offsets = [0, 31], sizes = [8, 1], strides = [1, 1]} : vector<8x32xi32> to vector<8x1xi32>
    %115 = vector.extract_strided_slice %110 {offsets = [0, 0], sizes = [8, 31], strides = [1, 1]} : vector<8x32xi32> to vector<8x31xi32>
    %116 = tpu.concatenate %114, %115 in 1 : vector<8x1xi32>, vector<8x31xi32> -> vector<8x32xi32>
    %117 = arith.select %21, %113, %116 : vector<8x32xi1>, vector<8x32xi32>
    %118 = arith.minsi %110, %117 : vector<8x32xi32>
    %119 = vector.extract_strided_slice %118 {offsets = [0, 2], sizes = [8, 30], strides = [1, 1]} : vector<8x32xi32> to vector<8x30xi32>
    %120 = vector.extract_strided_slice %118 {offsets = [0, 0], sizes = [8, 2], strides = [1, 1]} : vector<8x32xi32> to vector<8x2xi32>
    %121 = tpu.concatenate %119, %120 in 1 : vector<8x30xi32>, vector<8x2xi32> -> vector<8x32xi32>
    %122 = vector.extract_strided_slice %118 {offsets = [0, 30], sizes = [8, 2], strides = [1, 1]} : vector<8x32xi32> to vector<8x2xi32>
    %123 = vector.extract_strided_slice %118 {offsets = [0, 0], sizes = [8, 30], strides = [1, 1]} : vector<8x32xi32> to vector<8x30xi32>
    %124 = tpu.concatenate %122, %123 in 1 : vector<8x2xi32>, vector<8x30xi32> -> vector<8x32xi32>
    %125 = arith.select %25, %121, %124 : vector<8x32xi1>, vector<8x32xi32>
    %126 = arith.minsi %118, %125 : vector<8x32xi32>
    %127 = vector.extract_strided_slice %126 {offsets = [0, 4], sizes = [8, 28], strides = [1, 1]} : vector<8x32xi32> to vector<8x28xi32>
    %128 = vector.extract_strided_slice %126 {offsets = [0, 0], sizes = [8, 4], strides = [1, 1]} : vector<8x32xi32> to vector<8x4xi32>
    %129 = tpu.concatenate %127, %128 in 1 : vector<8x28xi32>, vector<8x4xi32> -> vector<8x32xi32>
    %130 = vector.extract_strided_slice %126 {offsets = [0, 28], sizes = [8, 4], strides = [1, 1]} : vector<8x32xi32> to vector<8x4xi32>
    %131 = vector.extract_strided_slice %126 {offsets = [0, 0], sizes = [8, 28], strides = [1, 1]} : vector<8x32xi32> to vector<8x28xi32>
    %132 = tpu.concatenate %130, %131 in 1 : vector<8x4xi32>, vector<8x28xi32> -> vector<8x32xi32>
    %133 = arith.select %29, %129, %132 : vector<8x32xi1>, vector<8x32xi32>
    %134 = arith.minsi %126, %133 : vector<8x32xi32>
    %135 = arith.cmpi eq, %17, %134 : vector<8x32xi32>
    %136 = arith.extui %135 : vector<8x32xi1> to vector<8x32xi32>
    %137 = arith.sitofp %136 : vector<8x32xi32> to vector<8x32xf32>
    %138 = arith.subf %80, %80 : vector<8x32xf32>
    %139 = arith.addf %137, %138 : vector<8x32xf32>
    %c0_17 = arith.constant 0 : index
    %c0_18 = arith.constant 0 : index
    %140 = vector.load %arg8[%c0_17, %c0_18] : memref<8x32xf32, #tpu.memory_space<vmem>>, vector<8x32xf32>
    tpu.vector_store %arg8[%c0_17, %c0_18], %139 {strides = array<i32>} : memref<8x32xf32, #tpu.memory_space<vmem>>, vector<8x32xf32>,
    return
  }
  func.func @transform_0(%arg0: i32) -> (i32, i32) {
    %c0_i32 = arith.constant 0 : i32
    %c0_i32_0 = arith.constant 0 : i32
    return %arg0, %c0_i32 : i32, i32
  }
  func.func @transform_1(%arg0: i32) -> (i32, i32) {
    %c0_i32 = arith.constant 0 : i32
    %c0_i32_0 = arith.constant 0 : i32
    %c0_i32_1 = arith.constant 0 : i32
    return %c0_i32, %c0_i32_0 : i32, i32
  }
  func.func @transform_2(%arg0: i32) -> (i32, i32) {
    %c0_i32 = arith.constant 0 : i32
    %c0_i32_0 = arith.constant 0 : i32
    %c0_i32_1 = arith.constant 0 : i32
    return %c0_i32, %c0_i32_0 : i32, i32
  }
  func.func @transform_3(%arg0: i32) -> (i32, i32) {
    %c0_i32 = arith.constant 0 : i32
    %c0_i32_0 = arith.constant 0 : i32
    %c0_i32_1 = arith.constant 0 : i32
    return %c0_i32, %c0_i32_0 : i32, i32
  }
  func.func @transform_4(%arg0: i32) -> (i32, i32) {
    %c0_i32 = arith.constant 0 : i32
    %c0_i32_0 = arith.constant 0 : i32
    %c0_i32_1 = arith.constant 0 : i32
    return %c0_i32, %c0_i32_0 : i32, i32
  }
  func.func @transform_5(%arg0: i32) -> (i32, i32) {
    %c0_i32 = arith.constant 0 : i32
    %c0_i32_0 = arith.constant 0 : i32
    return %arg0, %c0_i32 : i32, i32
  }
  func.func @transform_6(%arg0: i32) -> (i32, i32) {
    %c0_i32 = arith.constant 0 : i32
    %c0_i32_0 = arith.constant 0 : i32
    return %arg0, %c0_i32 : i32, i32
  }
  func.func @transform_7(%arg0: i32) -> (i32, i32) {
    %c0_i32 = arith.constant 0 : i32
    %c0_i32_0 = arith.constant 0 : i32
    return %arg0, %c0_i32 : i32, i32
  }
}

</mosaic_0001>

<bundles_post_ra>
// kernel: tpu_custom_call.1
= control target key start
LH: loop header
LB: loop body
LE: loop exit
PB: predicated region body
PF: predicated region fallthrough
CT: control target
= control target key end

     0   :  { %13 = vsyncpa [#allocation3], 0  ;;  %s862_s0 = inlined_call_operand.hbm [shape: bf16[8,32], index: 0, kind: input, shape index: {}]   ;;  %s863_s1 = inlined_call_operand.hbm [shape: bf16[32,32], index: 1, kind: input, shape index: {}]   ;;  %s864_s2 = inlined_call_operand.vmem [shape: f32[1,32], index: 2, kind: input, shape index: {}]   ;;  %s865_s3 = inlined_call_operand.hbm [shape: bf16[32,32], index: 3, kind: input, shape index: {}]   ;;  %s866_s4 = inlined_call_operand.vmem [shape: f32[1,32], index: 4, kind: input, shape index: {}]   ;;  %s867_s5 = inlined_call_operand.vmem [shape: bf16[8,32], index: 5, kind: input, shape index: {}]   ;;  %s868_s6 = inlined_call_operand.hbm [shape: f32[8,32], index: 6, kind: output, shape index: {0}]   ;;  %s869_s7 = inlined_call_operand.hbm [shape: f32[8,32], index: 7, kind: output, shape index: {1}]  }
   0x1   :  { %14 = vsyncpa [#allocation6], 0 }
   0x2   :  { %15 = vsyncpa [#allocation4], 0 }
   0x3   :  { %16 = vsyncpa [#allocation10], 0  ;;  %s624_s24 = smov [#allocation5]  }
   0x4   :  { %s32_s25 = sshll.u32 %s624_s24, 4  ;;  %s33_s25 = int_to_ptr.vmem [resolvable:$true] %s32_s25 }
   0x5   :  { %s524_s26 = scalar_lea.vmem %s33_s25, 256  ;;  %p529_p1 = scmp.lt.s32.totalorder %s33_s25, %s33_s25 }
   0x6   :  { %p525_p0 = scmp.ne.s32.totalorder %s33_s25, %s524_s26  ;;  %p530_p2 = scmp.lt.s32.totalorder %s524_s26, %s524_s26 }
   0x8   :  { %p531_p3 = por %p530_p2, %p529_p1 }
   0xa   :  { %p532_p4 = pnand %p531_p3, %p525_p0 }
   0xc   :  { %535 = shalt.err (!%p532_p4)
}
   0xd   :  { %s625_s27 = smov 64   ;;  %s626_s28 = smov 4  }
   0xe   :  { %38 = dma.hbm_to_vmem [thread:$0]  %s863_s1, 256, %s33_s25, [#allocation6], %s625_s27, %s625_s27, %s626_s28  }
   0xf   :  { %s627_s8 = smov [#allocation2]   ;;  %s628_s10 = smov [#allocation7]  }
  0x10   :  { %s23_s9 = sshll.u32 %s627_s8, 4  ;;  %s46_s11 = sshll.u32 %s628_s10, 4  ;;  %s24_s9 = int_to_ptr.vmem [resolvable:$true] %s23_s9  ;;  %s47_s11 = int_to_ptr.vmem [resolvable:$true] %s46_s11 }
  0x11   :  { %s544_s12 = scalar_lea.vmem %s24_s9, 64  ;;  %p549_p6 = scmp.lt.s32.totalorder %s24_s9, %s24_s9 }
  0x12   :  { %p545_p5 = scmp.ne.s32.totalorder %s24_s9, %s544_s12  ;;  %p550_p7 = scmp.lt.s32.totalorder %s544_s12, %s544_s12 }
  0x14   :  { %p551_p8 = por %p550_p7, %p549_p6 }
  0x16   :  { %p552_p9 = pnand %p551_p8, %p545_p5 }
  0x18   :  { %555 = shalt.err (!%p552_p9)
}
  0x19   :  { %26 = dma.hbm_to_vmem [thread:$0]  %s862_s0, 64, %s24_s9, [#allocation3]  }
  0x1a   :  { %s564_s15 = scalar_lea.vmem %s47_s11, 256  ;;  %p569_p11 = scmp.lt.s32.totalorder %s47_s11, %s47_s11 }
  0x1b   :  { %p565_p10 = scmp.ne.s32.totalorder %s47_s11, %s564_s15  ;;  %p570_p12 = scmp.lt.s32.totalorder %s564_s15, %s564_s15 }
  0x1d   :  { %p571_p13 = por %p570_p12, %p569_p11 }
  0x1f   :  { %p572_p0 = pnand %p571_p13, %p565_p10 }
  0x21   :  { %575 = shalt.err (!%p572_p0)
}
  0x22   :  { %52 = dma.hbm_to_vmem [thread:$0]  %s865_s3, 256, %s47_s11, [#allocation6], %s625_s27, %s625_s27, %s626_s28  }
  0x23   :  { %616 = dma.done.wait [#allocation3], 64  }
  0x24   :  { %617 = vsyncadd [#allocation3], 4294967232 }
  0x25   :  { %618 = dma.done.wait [#allocation6], 512  }
  0x26   :  { %619 = vsyncadd [#allocation6], 4294966784  ;;  %v629_v0 = vmov 0.0   ;;  %vm630_vm0 = vmmov 0   ;;  %v508_v1 = vld [vmem:[#allocation5 + $0x8] sm:$0xff]   ;;  %v509_v2 = vld [vmem:[#allocation5] sm:$0xff]   ;;  %v204_v23 = vlaneseq }
  0x27   :  { %472 = vmatprep.subr.bf16.mxu0 %v629_v0  ;;  %476 = vmatprep.mubr.msk.bf16.mxu0 %vm630_vm0, %v629_v0  ;;  %v67_v3 = vld [vmem:[#allocation2] sm:$0xf]  ;;  %vm91_vm1 = vcmask 261120   ;;  %v511_v5 = vld [vmem:[#allocation7] sm:$0xff]   ;;  %s632_s21 = smov 127   ;;  %s634_s22 = smov 31  }
  0x28   :  { %480 = vmatprep.subr.bf16.mxu1 %v629_v0  ;;  %484 = vmatprep.mubr.msk.bf16.mxu1 %vm630_vm0, %v629_v0  ;;  %v510_v4 = vld [vmem:[#allocation7 + $0x8] sm:$0xff]   ;;  %v205_v24 = vand.u32 127, %v204_v23  ;;  %vm228_vm2 = vcmask 7168   ;;  %vm220_vm3 = vcmask 252928   ;;  %s636_s23 = smov 126   ;;  %s637_s24 = smov 2  }
  0x29   :  { %473 = vmatpush3.bf16.msra.mxu0 %v508_v1  ;;  %481 = vmatpush3.bf16.msra.mxu1 %v510_v4  ;;  %v457_v6 = vld [vmem:[%s864_s2] ss:$0 sm:$0xff]  ;;  %s631_s2 = smov 97   ;;  %s638_s25 = smov 98   ;;  %vm239_vm5 = vcmask 244736   ;;  %vm247_vm6 = vcmask 15360  }
  0x2a   :  { %474 = vmatprep.subr.bf16.mxu0 %v629_v0  ;;  %482 = vmatprep.subr.bf16.mxu1 %v629_v0  ;;  %v461_v14 = vld [vmem:[%s866_s4] ss:$0 sm:$0xff]  ;;  %s633_s4 = smov 1   ;;  %v735_v25 = vand.u32 7, %v205_v24  ;;  %s639_s26 = smov 28   ;;  %vm258_vm8 = vcmask 228352  }
  0x2b   :  { %v326_v18 = vld [vmem:[%s867_s5] sm:$0xf]  ;;  %s635_s5 = smov 30   ;;  %s640_s27 = smov 124   ;;  %vm266_vm9 = vcmask 31744  }
  0x2c   :  { %v327_v20 = vunpack.c.l.bf16 %v326_v18  ;;  %v207_v26 = vand.u32 1, %v735_v25  ;;  %v209_v44 = vand.u32 2, %v735_v25  ;;  %s641_s29 = smov 100   ;;  %v211_v62 = vand.u32 4, %v735_v25  ;;  %s642_s30 = smov [#allocation8]  }
  0x2d   :  { %475 = vmatpush3.bf16.msra.mxu0 %v509_v2  ;;  %483 = vmatpush3.bf16.msra.mxu1 %v511_v5  ;;  %s433_s8 = sshll.u32 %s642_s30, 4  ;;  %s434_s8 = int_to_ptr.vmem [resolvable:$true] %s433_s8 }
  0x2e   :  { %vm738_vm4 = vcmp.eq.s32.totalorder %v207_v26, 0  ;;  %vm761_vm7 = vcmp.eq.s32.totalorder %v209_v44, 0  ;;  %vm782_vm10 = vcmp.eq.s32.totalorder %v211_v62, 0  ;;  %s576_s9 = scalar_lea.vmem %s434_s8, 128  ;;  %p581_p2 = scmp.lt.s32.totalorder %s434_s8, %s434_s8 }
  0x2f   :  { %p577_p1 = scmp.ne.s32.totalorder %s434_s8, %s576_s9  ;;  %p582_p3 = scmp.lt.s32.totalorder %s576_s9, %s576_s9 }
  0x30   :  { %477 = vmatmul.mubr.msk.bf16.vlgmr.msra.gmra.mxu0 %vm91_vm1, %v67_v3 }
  0x31   :  { %p583_p4 = por %p582_p3, %p581_p2 }
  0x33   :  { %p584_p5 = pnand %p583_p4, %p577_p1 }
  0xf0   :  { %v129_v7 = vpop.f32.mrf.mxu0 }
  0xf1   :  { %v130_v8 = vadd.f32 %v457_v6, %v129_v7 }
  0xf2   :  { %v478_v9 = vpop.f32.mrf.mxu0 }
  0xf3   :  { %v135_v10 = vmax.f32 %v130_v8, 0.0 }
  0xf4   :  { %v132_v11 = vpop.f32.mrf.mxu0 }
  0xf5   :  { %v136_v12 = vpack.c.bf16 %v135_v10, %v135_v10 }
  0xf6   :  { %v479_v13 = vpop.f32.mrf.mxu0 }
  0xf7   :  { %485 = vmatmul.mubr.msk.bf16.vlgmr.msra.gmra.mxu1 %vm91_vm1, %v136_v12 }
 0x1b7   :  { %v197_v15 = vpop.f32.mrf.mxu1 }
 0x1b8   :  { %v709_v16 = vadd.f32 %v461_v14, %v197_v15 }
 0x1b9   :  { %v486_v17 = vpop.f32.mrf.mxu1 }
 0x1ba   :  { %203 = vst.msk [vmem:[#allocation8] sm:$0xff] %vm91_vm1, %v709_v16  ;;  %222 = vrot.lane.b32.xlu1 %v709_v16, %s631_s2  ;;  %214 = vrot.lane.b32.xlu0 %v709_v16, %s632_s21  ;;  %v725_v22 = vadd.f32 %v327_v20, %v709_v16 }
 0x1bb   :  { %v200_v19 = vpop.f32.mrf.mxu1 }
 0x1bd   :  { %v487_v21 = vpop.f32.mrf.mxu1 }
 0x1be   :  { %225 = vrot.lane.b32.xlu1 %v709_v16, %s633_s4  ;;  %217 = vrot.lane.b32.xlu0 %v709_v16, %s634_s22 }
 0x1c2   :  { %333 = vrot.lane.b32.xlu1 %v725_v22, %s634_s22  ;;  %330 = vrot.lane.b32.xlu0 %v725_v22, %s632_s21 }
 0x1c6   :  { %340 = vrot.lane.b32.xlu1 %v725_v22, %s633_s4  ;;  %337 = vrot.lane.b32.xlu0 %v725_v22, %s631_s2 }
 0x22c   :  { %v223_v27 = vpop.permute.xlu1 %222  ;;  %v215_v28 = vpop.permute.xlu0 %214 }
 0x230   :  { %v226_v30 = vpop.permute.xlu1 %225  ;;  %v218_v31 = vpop.permute.xlu0 %217 }
 0x231   :  { %v229_v32 = vsel %vm228_vm2, %v223_v27, %v226_v30  ;;  %v221_v33 = vsel %vm220_vm3, %v215_v28, %v218_v31 }
 0x232   :  { %v230_v34 = vsel %vm738_vm4, %v221_v33, %v229_v32 }
 0x233   :  { %v231_v35 = vmax.f32 %v709_v16, %v230_v34 }
 0x234   :  { %v334_v36 = vpop.permute.xlu1 %333  ;;  %v331_v37 = vpop.permute.xlu0 %330 }
 0x235   :  { %236 = vrot.lane.b32.xlu1 %v231_v35, %s635_s5  ;;  %233 = vrot.lane.b32.xlu0 %v231_v35, %s636_s23  ;;  %v336_v40 = vsel %vm220_vm3, %v331_v37, %v334_v36 }
 0x238   :  { %v341_v38 = vpop.permute.xlu1 %340  ;;  %v338_v39 = vpop.permute.xlu0 %337 }
 0x239   :  { %v343_v41 = vsel %vm228_vm2, %v338_v39, %v341_v38  ;;  %244 = vrot.lane.b32.xlu1 %v231_v35, %s637_s24  ;;  %241 = vrot.lane.b32.xlu0 %v231_v35, %s638_s25 }
 0x23a   :  { %v344_v42 = vsel %vm738_vm4, %v336_v40, %v343_v41 }
 0x23b   :  { %v345_v43 = vmax.f32 %v725_v22, %v344_v42 }
 0x23d   :  { %350 = vrot.lane.b32.xlu1 %v345_v43, %s635_s5  ;;  %347 = vrot.lane.b32.xlu0 %v345_v43, %s636_s23 }
 0x241   :  { %357 = vrot.lane.b32.xlu1 %v345_v43, %s637_s24  ;;  %354 = vrot.lane.b32.xlu0 %v345_v43, %s638_s25 }
 0x2a7   :  { %v237_v45 = vpop.permute.xlu1 %236  ;;  %v234_v46 = vpop.permute.xlu0 %233 }
 0x2a8   :  { %v240_v50 = vsel %vm239_vm5, %v234_v46, %v237_v45 }
 0x2ab   :  { %v245_v48 = vpop.permute.xlu1 %244  ;;  %v242_v49 = vpop.permute.xlu0 %241 }
 0x2ac   :  { %v248_v51 = vsel %vm247_vm6, %v242_v49, %v245_v48 }
 0x2ad   :  { %v249_v52 = vsel %vm761_vm7, %v240_v50, %v248_v51 }
 0x2ae   :  { %v250_v53 = vmax.f32 %v231_v35, %v249_v52 }
 0x2af   :  { %v351_v54 = vpop.permute.xlu1 %350  ;;  %v348_v55 = vpop.permute.xlu0 %347 }
 0x2b0   :  { %255 = vrot.lane.b32.xlu1 %v250_v53, %s639_s26  ;;  %252 = vrot.lane.b32.xlu0 %v250_v53, %s640_s27  ;;  %v353_v58 = vsel %vm239_vm5, %v348_v55, %v351_v54 }
 0x2b3   :  { %v358_v56 = vpop.permute.xlu1 %357  ;;  %v355_v57 = vpop.permute.xlu0 %354 }
 0x2b4   :  { %v360_v59 = vsel %vm247_vm6, %v355_v57, %v358_v56  ;;  %263 = vrot.lane.b32.xlu1 %v250_v53, %s626_s28  ;;  %260 = vrot.lane.b32.xlu0 %v250_v53, %s641_s29 }
 0x2b5   :  { %v361_v60 = vsel %vm761_vm7, %v353_v58, %v360_v59 }
 0x2b6   :  { %v362_v61 = vmax.f32 %v345_v43, %v361_v60 }
 0x2b8   :  { %367 = vrot.lane.b32.xlu1 %v362_v61, %s639_s26  ;;  %364 = vrot.lane.b32.xlu0 %v362_v61, %s640_s27 }
 0x2bc   :  { %374 = vrot.lane.b32.xlu1 %v362_v61, %s626_s28  ;;  %371 = vrot.lane.b32.xlu0 %v362_v61, %s641_s29 }
 0x322   :  { %v256_v63 = vpop.permute.xlu1 %255  ;;  %v253_v1 = vpop.permute.xlu0 %252 }
 0x323   :  { %v259_v5 = vsel %vm258_vm8, %v253_v1, %v256_v63 }
 0x326   :  { %v264_v3 = vpop.permute.xlu1 %263  ;;  %v261_v4 = vpop.permute.xlu0 %260 }
 0x327   :  { %v267_v6 = vsel %vm266_vm9, %v261_v4, %v264_v3 }
 0x328   :  { %v268_v7 = vsel %vm782_vm10, %v259_v5, %v267_v6 }
 0x329   :  { %v269_v8 = vmax.f32 %v250_v53, %v268_v7 }
 0x32a   :  { %v368_v11 = vpop.permute.xlu1 %367  ;;  %v365_v12 = vpop.permute.xlu0 %364 }
 0x32b   :  { %v270_v9 = vsub.f32 %v709_v16, %v269_v8  ;;  %v370_v17 = vsel %vm258_vm8, %v365_v12, %v368_v11 }
 0x32d   :  { %v271_v10 = vmul.f32 1.442695, %v270_v9 }
 0x32e   :  { %v375_v13 = vpop.permute.xlu1 %374  ;;  %v372_v14 = vpop.permute.xlu0 %371 }
 0x32f   :  { %512 = vpow2.f32 %v271_v10  ;;  %v377_v15 = vsel %vm266_vm9, %v372_v14, %v375_v13 }
 0x330   :  { %v378_v18 = vsel %vm782_vm10, %v370_v17, %v377_v15 }
 0x331   :  { %v379_v20 = vmax.f32 %v362_v61, %v378_v18 }
 0x333   :  { %vm380_vm11 = vcmp.eq.f32.partialorder %v725_v22, %v379_v20 }
 0x334   :  { %v381_v16 = vsel %vm380_vm11, %v735_v25, 8 }
 0x33c   :  { %v795_v19 = vpop.eup %512 }
 0x33d   :  { %277 = vrot.lane.b32.xlu1 %v795_v19, %s634_s22  ;;  %274 = vrot.lane.b32.xlu0 %v795_v19, %s632_s21 }
 0x341   :  { %284 = vrot.lane.b32.xlu1 %v795_v19, %s633_s4  ;;  %281 = vrot.lane.b32.xlu0 %v795_v19, %s631_s2 }
 0x345   :  { %384 = vrot.lane.b32.xlu1 %v381_v16, %s634_s22  ;;  %382 = vrot.lane.b32.xlu0 %v381_v16, %s632_s21 }
 0x349   :  { %389 = vrot.lane.b32.xlu1 %v381_v16, %s633_s4  ;;  %387 = vrot.lane.b32.xlu0 %v381_v16, %s631_s2 }
 0x3af   :  { %v278_v21 = vpop.permute.xlu1 %277  ;;  %v275_v23 = vpop.permute.xlu0 %274 }
 0x3b0   :  { %v280_v26 = vsel %vm220_vm3, %v275_v23, %v278_v21 }
 0x3b3   :  { %v285_v24 = vpop.permute.xlu1 %284  ;;  %v282_v22 = vpop.permute.xlu0 %281 }
 0x3b4   :  { %v287_v27 = vsel %vm228_vm2, %v282_v22, %v285_v24 }
 0x3b5   :  { %v288_v28 = vsel %vm738_vm4, %v280_v26, %v287_v27 }
 0x3b6   :  { %v289_v30 = vadd.f32 %v795_v19, %v288_v28 }
 0x3b7   :  { %v385_v31 = vpop.permute.xlu1 %384  ;;  %v383_v32 = vpop.permute.xlu0 %382 }
 0x3b8   :  { %294 = vrot.lane.b32.xlu1 %v289_v30, %s635_s5  ;;  %291 = vrot.lane.b32.xlu0 %v289_v30, %s636_s23  ;;  %v386_v35 = vsel %vm220_vm3, %v383_v32, %v385_v31 }
 0x3bb   :  { %v390_v33 = vpop.permute.xlu1 %389  ;;  %v388_v34 = vpop.permute.xlu0 %387 }
 0x3bc   :  { %v391_v36 = vsel %vm228_vm2, %v388_v34, %v390_v33  ;;  %301 = vrot.lane.b32.xlu1 %v289_v30, %s637_s24  ;;  %298 = vrot.lane.b32.xlu0 %v289_v30, %s638_s25 }
 0x3bd   :  { %v392_v37 = vsel %vm738_vm4, %v386_v35, %v391_v36 }
 0x3be   :  { %vm393_vm12 = vcmp.lt.s32.totalorder %v381_v16, %v392_v37 }
 0x3bf   :  { %v394_v38 = vsel %vm393_vm12, %v381_v16, %v392_v37 }
 0x3c0   :  { %397 = vrot.lane.b32.xlu1 %v394_v38, %s635_s5  ;;  %395 = vrot.lane.b32.xlu0 %v394_v38, %s636_s23 }
 0x3c4   :  { %402 = vrot.lane.b32.xlu1 %v394_v38, %s637_s24  ;;  %400 = vrot.lane.b32.xlu0 %v394_v38, %s638_s25 }
 0x42a   :  { %v295_v39 = vpop.permute.xlu1 %294  ;;  %v292_v40 = vpop.permute.xlu0 %291 }
 0x42b   :  { %v297_v43 = vsel %vm239_vm5, %v292_v40, %v295_v39 }
 0x42e   :  { %v302_v41 = vpop.permute.xlu1 %301  ;;  %v299_v42 = vpop.permute.xlu0 %298 }
 0x42f   :  { %v304_v44 = vsel %vm247_vm6, %v299_v42, %v302_v41 }
 0x430   :  { %v305_v29 = vsel %vm761_vm7, %v297_v43, %v304_v44 }
 0x431   :  { %v306_v45 = vadd.f32 %v305_v29, %v289_v30 }
 0x432   :  { %v398_v46 = vpop.permute.xlu1 %397  ;;  %v396_v48 = vpop.permute.xlu0 %395 }
 0x433   :  { %311 = vrot.lane.b32.xlu1 %v306_v45, %s639_s26  ;;  %308 = vrot.lane.b32.xlu0 %v306_v45, %s640_s27  ;;  %v399_v51 = vsel %vm239_vm5, %v396_v48, %v398_v46 }
 0x436   :  { %v403_v49 = vpop.permute.xlu1 %402  ;;  %v401_v50 = vpop.permute.xlu0 %400 }
 0x437   :  { %v404_v52 = vsel %vm247_vm6, %v401_v50, %v403_v49  ;;  %318 = vrot.lane.b32.xlu1 %v306_v45, %s626_s28  ;;  %315 = vrot.lane.b32.xlu0 %v306_v45, %s641_s29 }
 0x438   :  { %v405_v53 = vsel %vm761_vm7, %v399_v51, %v404_v52 }
 0x439   :  { %vm406_vm13 = vcmp.lt.s32.totalorder %v394_v38, %v405_v53 }
 0x43a   :  { %587 = shalt.err (!%p584_p5)
}
 0x43b   :  { %436 = dma.vmem_to_hbm [thread:$0]  %s434_s8, 128, %s868_s6, [#allocation4]   ;;  %v407_v54 = vsel %vm406_vm13, %v394_v38, %v405_v53 }
 0x43c   :  { %410 = vrot.lane.b32.xlu1 %v407_v54, %s639_s26  ;;  %408 = vrot.lane.b32.xlu0 %v407_v54, %s640_s27  ;;  %s643_s6 = smov [#allocation9]  }
 0x440   :  { %415 = vrot.lane.b32.xlu1 %v407_v54, %s626_s28  ;;  %413 = vrot.lane.b32.xlu0 %v407_v54, %s641_s29  ;;  %s443_s28 = sshll.u32 %s643_s6, 4  ;;  %s444_s28 = int_to_ptr.vmem [resolvable:$true] %s443_s28 }
 0x441   :  { %s596_s12 = scalar_lea.vmem %s444_s28, 128  ;;  %p601_p7 = scmp.lt.s32.totalorder %s444_s28, %s444_s28 }
 0x442   :  { %p597_p6 = scmp.ne.s32.totalorder %s444_s28, %s596_s12  ;;  %p602_p8 = scmp.lt.s32.totalorder %s596_s12, %s596_s12 }
 0x444   :  { %p603_p9 = por %p602_p8, %p601_p7 }
 0x446   :  { %p604_p10 = pnand %p603_p9, %p597_p6 }
 0x4a5   :  { %v312_v47 = vpop.permute.xlu1 %311  ;;  %v309_v55 = vpop.permute.xlu0 %308 }
 0x4a6   :  { %v314_v58 = vsel %vm258_vm8, %v309_v55, %v312_v47 }
 0x4a9   :  { %v319_v56 = vpop.permute.xlu1 %318  ;;  %v316_v57 = vpop.permute.xlu0 %315 }
 0x4aa   :  { %v321_v59 = vsel %vm266_vm9, %v316_v57, %v319_v56 }
 0x4ab   :  { %v322_v60 = vsel %vm782_vm10, %v314_v58, %v321_v59 }
 0x4ac   :  { %v323_v61 = vadd.f32 %v322_v60, %v306_v45 }
 0x4ae   :  { %v411_v62 = vpop.permute.xlu1 %410  ;;  %v409_v63 = vpop.permute.xlu0 %408  ;;  %514 = vrcp.f32 %v323_v61 }
 0x4af   :  { %v412_v4 = vsel %vm258_vm8, %v409_v63, %v411_v62 }
 0x4b2   :  { %v416_v1 = vpop.permute.xlu1 %415  ;;  %v414_v3 = vpop.permute.xlu0 %413 }
 0x4b3   :  { %v417_v5 = vsel %vm266_vm9, %v414_v3, %v416_v1 }
 0x4b4   :  { %v418_v6 = vsel %vm782_vm10, %v412_v4, %v417_v5 }
 0x4b5   :  { %vm419_vm14 = vcmp.lt.s32.totalorder %v407_v54, %v418_v6 }
 0x4b6   :  { %v420_v7 = vsel %vm419_vm14, %v407_v54, %v418_v6 }
 0x4b7   :  { %vm421_vm15 = vcmp.eq.s32.totalorder %v735_v25, %v420_v7 }
 0x4b8   :  { %v465_v11 = vsel %vm421_vm15, 1.0, %v629_v0 }
 0x4bb   :  { %v515_v8 = vpop.eup %514 }
 0x4bc   :  { %v325_v9 = vmul.f32 %v515_v8, %v795_v19 }
 0x4be   :  { %v424_v10 = vsub.f32 %v325_v9, %v325_v9 }
 0x4c0   :  { %v425_v12 = vadd.f32 %v465_v11, %v424_v10 }
 0x4c2   :  { %426 = vst.msk [vmem:[#allocation9] sm:$0xff] %vm91_vm1, %v425_v12 }
 0x4c3   :  { %607 = shalt.err (!%p604_p10)
}
 0x4c4   :  { %446 = dma.vmem_to_hbm [thread:$0]  %s444_s28, 128, %s869_s7, [#allocation10]  }
 0x4c5   :  { %620 = dma.done.wait [#allocation4], 128  }
 0x4c6   :  { %621 = vsyncadd [#allocation4], 4294967168 }
 0x4c7   :  { %622 = dma.done.wait [#allocation10], 128  }
 0x4c8   :  { %623 = vsyncadd [#allocation10], 4294967168 }
 0x4c9   :  { %453 = vsyncpa [#allocation3], 1 }
 0x4ca   :  { %454 = vsyncpa [#allocation6], 1 }
 0x4cb   :  { %455 = vsyncpa [#allocation4], 1 }
 0x4cc   :  { %456 = vsyncpa [#allocation10], 1 }

</bundles_post_ra>
